<compile_context>
chip_gen: v7x
topology: tpu7x:2x2x1
jax: 0.10.0
libtpu: 0.0.40
codegen_flags: <defaults>
</compile_context>

<pallas_src>
import functools

import jax
import jax.numpy as jnp
from jax.experimental import pallas as pl
from jax.experimental.pallas import tpu as pltpu


def _round_up(x: int, m: int) -> int:
    return ((x + m - 1) // m) * m


def _make_kernel(dilations, l_pad: int, valid_len: int):
    """Fused (weight_norm + dilated 3-tap conv + bias + tanh + residual) x len(dilations)."""

    def kernel(params_ref, x_ref, o_ref):
        # Column-validity mask, hoisted: computed once and reused by every layer.
        col = jax.lax.broadcasted_iota(jnp.int32, x_ref.shape, 1)
        valid = col < valid_len

        xv = x_ref[...]                                   # single (Np, Lp) load
        for layer, d in enumerate(dilations):             # static 3-iteration unroll
            base = layer * 5
            v0 = params_ref[base + 0]                      # SMEM scalar reads (static idx)
            v1 = params_ref[base + 1]
            v2 = params_ref[base + 2]
            g = params_ref[base + 3]
            b = params_ref[base + 4]

            # weight_norm (PyTorch default dim=0): w = g * v / ||v||.
            # Sum-of-squares rides the scalar slots; the rsqrt stays on a (1,1)
            # vreg (EUP) because Mosaic does not reliably lower scalar-core
            # transcendentals -- the cost is one (1,1) EUP op plus one extra
            # full-block multiply per layer (~8 vregs), invisible under launch
            # overhead for this 32 KiB problem.
            vsq = v0 * v0 + v1 * v1 + v2 * v2
            scale = g * jax.lax.rsqrt(jnp.full((1, 1), vsq, dtype=jnp.float32))

            # Dilated conv taps via XLU rolls.  Columns >= L are zero on entry to
            # every layer, so the wrap-around only ever picks up the Conv1d zero
            # padding.
            left = pltpu.roll(xv, d, 1)                    # left[t]  = xv[t - d]
            right = pltpu.roll(xv, l_pad - d, 1)           # right[t] = xv[t + d]
            conv = v0 * left + v1 * xv + v2 * right        # scalar x vector (VPU)
            # TODO(synk): nn.Dropout(0.2) is treated as identity (inference semantics).
            act = jnp.tanh(scale * conv + b) + xv          # bias + tanh + residual (1->1 ch)

            # Re-zero the pad columns so the NEXT layer's rolls never ingest the
            # tanh(bias)+residual garbage these columns would otherwise hold;
            # also keeps the output slab clean past L.
            xv = jnp.where(valid, act, 0.0)

        o_ref[...] = xv                                    # lane-dense, unmasked stores

    return kernel


@functools.partial(jax.jit, static_argnames=("dilations",))
def temporal_conv_stack(x1, vs, gs, bs, *, dilations=(1, 2, 4)):
    """Fused Pallas implementation of N chained TemporalConvLayer.forward calls.

    Args:
      x1: (N, 1, L) float32 input (PyTorch NCL layout; the module forces C == 1).
      vs: tuple of per-layer (1, 1, 3) weight_norm direction 'v' tensors.
      gs: tuple of per-layer (1, 1, 1) weight_norm magnitude 'g' tensors.
      bs: tuple of per-layer (1,) Conv1d bias tensors.
      dilations: static tuple of ints, one per layer (kernel_size fixed at 3).

    Returns:
      (N, 1, L) float32, identical to chaining the PyTorch modules.
    """
    N, C, L = x1.shape
    assert C == 1, "module forward forces a single channel via .view()"
    dils = tuple(int(d) for d in dilations)
    assert len(vs) == len(gs) == len(bs) == len(dils)

    # Sublane/lane-dense working shape; the >= max(d) zero columns past L also
    # provide the Conv1d zero padding consumed by the in-kernel rolls.
    n_pad = _round_up(N, 8)
    l_pad = _round_up(L + max(dils), 128)

    # ONE flat 1-D SMEM operand: [v0, v1, v2, g, b] per layer.
    params = jnp.concatenate(
        [jnp.concatenate([jnp.ravel(v), jnp.ravel(g), jnp.ravel(b)])
         for v, g, b in zip(vs, gs, bs)]
    ).astype(jnp.float32)

    x = x1.reshape(N, L).astype(jnp.float32)
    xp = jnp.pad(x, ((0, n_pad - N), (0, l_pad - L)))      # pad ONCE for the whole stack

    out = pl.pallas_call(
        _make_kernel(dils, l_pad, L),
        out_shape=jax.ShapeDtypeStruct((n_pad, l_pad), jnp.float32),
        in_specs=[
            pl.BlockSpec(memory_space=pltpu.MemorySpace.SMEM),  # packed params (5 * n_layers,)
            pl.BlockSpec(memory_space=pltpu.MemorySpace.VMEM),  # x padded (Np, Lp)
        ],
        out_specs=pl.BlockSpec(memory_space=pltpu.MemorySpace.VMEM),
        # Single ungridded call: the whole stack is one ~32 KiB block (launch
        # bound).  Only introduce a ("parallel", ...) grid when a real batch
        # dimension appears; size row tiles for v7x's 64 MiB VMEM at that point.
    )(params, xp)

    # slice ONCE at the very end.  (If the consumer is another fused op, hand it
    # the padded (n_pad, l_pad) slab instead of re-slicing.)
    return out[:N, None, :L]


def temporal_conv_layer(x1, v, g, b, *, dilation: int):
    """Single TemporalConvLayer.forward (thin wrapper over the fused stack)."""
    return temporal_conv_stack(x1, (v,), (g,), (b,), dilations=(int(dilation),))


def _reference_layer(x1, v, g, b, dilation):
    """Plain-JAX reference (pad + slices; independent of pltpu.roll)."""
    norm = jnp.sqrt(jnp.sum(v * v))
    w = (g.reshape(()) * v.reshape(-1)) / norm             # (3,) effective weights
    x = x1[:, 0, :].astype(jnp.float32)
    L = x.shape[1]
    xpad = jnp.pad(x, ((0, 0), (dilation, dilation)))
    conv = sum(w[k] * xpad[:, k * dilation:k * dilation + L] for k in range(3)) + b[0]
    return (jnp.tanh(conv) + x)[:, None, :]


if __name__ == "__main__":
    # Shapes implied by WE-STGCN: num_nodes=30 rows, 1 channel, 168 time steps;
    # the stack uses dilations 1, 2, 4.
    N, L = 30, 168
    key = jax.random.PRNGKey(0)
    x1 = jax.random.uniform(jax.random.fold_in(key, 0), (N, 1, L), dtype=jnp.float32)

    dilations = (1, 2, 4)
    vs, gs, bs = [], [], []
    for i in range(len(dilations)):
        kv, kb = jax.random.split(jax.random.fold_in(key, i + 1))
        v = jax.random.normal(kv, (1, 1, 3), dtype=jnp.float32) * 0.5
        # PyTorch weight_norm init sets g = ||v||, so the effective weight equals v.
        g = jnp.sqrt(jnp.sum(v * v, axis=(1, 2), keepdims=True))
        b = jax.random.normal(kb, (1,), dtype=jnp.float32) * 0.1
        vs.append(v); gs.append(g); bs.append(b)

    # Fused 3-layer stack (single pallas_call).
    out = jax.block_until_ready(
        temporal_conv_stack(x1, tuple(vs), tuple(gs), tuple(bs), dilations=dilations))

    ref = x1
    for v, g, b, d in zip(vs, gs, bs, dilations):
        ref = _reference_layer(ref, v, g, b, d)

    assert out.shape == (N, 1, L)
    assert jnp.allclose(out, ref, atol=3e-5, rtol=3e-5), "fused stack mismatch"

    # Single-layer entry point (TemporalConvLayer.forward semantics).
    out1 = jax.block_until_ready(temporal_conv_layer(x1, vs[1], gs[1], bs[1], dilation=2))
    ref1 = _reference_layer(x1, vs[1], gs[1], bs[1], 2)
    assert out1.shape == (N, 1, L)
    assert jnp.allclose(out1, ref1, atol=1e-5, rtol=1e-5), "single layer mismatch"

    print("KERNEL_OK")
</pallas_src>

<mosaic_0001>
module attributes {stable_mosaic.version = 11 : i64} {
  func.func @kernel(%arg0: memref<15xf32, #tpu.memory_space<smem>>, %arg1: memref<32x256xf32, #tpu.memory_space<vmem>>, %arg2: memref<32x256xf32, #tpu.memory_space<vmem>>) attributes {dimension_semantics = [], scalar_prefetch = 0 : i64, scratch_operands = 0 : i64, tpu.core_type = #tpu.core_type<tc>} {
    %0 = tpu.iota {dimensions = array<i32: 1>} : vector<32x256xi32>
    %c168_i32 = arith.constant 168 : i32
    %1 = vector.broadcast %c168_i32 : i32 to vector<32x256xi32>
    %2 = arith.cmpi slt, %0, %1 : vector<32x256xi32>
    %c0 = arith.constant 0 : index
    %c0_0 = arith.constant 0 : index
    %3 = vector.load %arg1[%c0, %c0_0] : memref<32x256xf32, #tpu.memory_space<vmem>>, vector<32x256xf32>
    %c0_1 = arith.constant 0 : index
    %4 = memref.load %arg0[%c0_1] : memref<15xf32, #tpu.memory_space<smem>>
    %c1 = arith.constant 1 : index
    %5 = memref.load %arg0[%c1] : memref<15xf32, #tpu.memory_space<smem>>
    %c2 = arith.constant 2 : index
    %6 = memref.load %arg0[%c2] : memref<15xf32, #tpu.memory_space<smem>>
    %c3 = arith.constant 3 : index
    %7 = memref.load %arg0[%c3] : memref<15xf32, #tpu.memory_space<smem>>
    %c4 = arith.constant 4 : index
    %8 = memref.load %arg0[%c4] : memref<15xf32, #tpu.memory_space<smem>>
    %9 = arith.mulf %4, %4 : f32
    %10 = arith.mulf %5, %5 : f32
    %11 = arith.addf %9, %10 : f32
    %12 = arith.mulf %6, %6 : f32
    %13 = arith.addf %11, %12 : f32
    %14 = vector.broadcast %13 : f32 to vector<1x1xf32>
    %15 = math.rsqrt %14 : vector<1x1xf32>
    %16 = vector.broadcast %7 : f32 to vector<1x1xf32>
    %17 = arith.mulf %16, %15 : vector<1x1xf32>
    %c1_i32 = arith.constant 1 : i32
    %18 = tpu.dynamic_rotate %3 by %c1_i32 dim 1 : vector<32x256xf32>, i32 -> vector<32x256xf32>
    %c255_i32 = arith.constant 255 : i32
    %19 = tpu.dynamic_rotate %3 by %c255_i32 dim 1 : vector<32x256xf32>, i32 -> vector<32x256xf32>
    %20 = vector.broadcast %4 : f32 to vector<32x256xf32>
    %21 = arith.mulf %20, %18 : vector<32x256xf32>
    %22 = vector.broadcast %5 : f32 to vector<32x256xf32>
    %23 = arith.mulf %22, %3 : vector<32x256xf32>
    %24 = arith.addf %21, %23 : vector<32x256xf32>
    %25 = vector.broadcast %6 : f32 to vector<32x256xf32>
    %26 = arith.mulf %25, %19 : vector<32x256xf32>
    %27 = arith.addf %24, %26 : vector<32x256xf32>
    %28 = vector.broadcast %17 : vector<1x1xf32> to vector<32x256xf32>
    %29 = arith.mulf %28, %27 : vector<32x256xf32>
    %30 = vector.broadcast %8 : f32 to vector<32x256xf32>
    %31 = arith.addf %29, %30 : vector<32x256xf32>
    %32 = math.tanh %31 : vector<32x256xf32>
    %33 = arith.addf %32, %3 : vector<32x256xf32>
    %cst = arith.constant 0.000000e+00 : f32
    %34 = vector.broadcast %cst : f32 to vector<32x256xf32>
    %35 = arith.select %2, %33, %34 : vector<32x256xi1>, vector<32x256xf32>
    %c5 = arith.constant 5 : index
    %36 = memref.load %arg0[%c5] : memref<15xf32, #tpu.memory_space<smem>>
    %c6 = arith.constant 6 : index
    %37 = memref.load %arg0[%c6] : memref<15xf32, #tpu.memory_space<smem>>
    %c7 = arith.constant 7 : index
    %38 = memref.load %arg0[%c7] : memref<15xf32, #tpu.memory_space<smem>>
    %c8 = arith.constant 8 : index
    %39 = memref.load %arg0[%c8] : memref<15xf32, #tpu.memory_space<smem>>
    %c9 = arith.constant 9 : index
    %40 = memref.load %arg0[%c9] : memref<15xf32, #tpu.memory_space<smem>>
    %41 = arith.mulf %36, %36 : f32
    %42 = arith.mulf %37, %37 : f32
    %43 = arith.addf %41, %42 : f32
    %44 = arith.mulf %38, %38 : f32
    %45 = arith.addf %43, %44 : f32
    %46 = vector.broadcast %45 : f32 to vector<1x1xf32>
    %47 = math.rsqrt %46 : vector<1x1xf32>
    %48 = vector.broadcast %39 : f32 to vector<1x1xf32>
    %49 = arith.mulf %48, %47 : vector<1x1xf32>
    %c2_i32 = arith.constant 2 : i32
    %50 = tpu.dynamic_rotate %35 by %c2_i32 dim 1 : vector<32x256xf32>, i32 -> vector<32x256xf32>
    %c254_i32 = arith.constant 254 : i32
    %51 = tpu.dynamic_rotate %35 by %c254_i32 dim 1 : vector<32x256xf32>, i32 -> vector<32x256xf32>
    %52 = vector.broadcast %36 : f32 to vector<32x256xf32>
    %53 = arith.mulf %52, %50 : vector<32x256xf32>
    %54 = vector.broadcast %37 : f32 to vector<32x256xf32>
    %55 = arith.mulf %54, %35 : vector<32x256xf32>
    %56 = arith.addf %53, %55 : vector<32x256xf32>
    %57 = vector.broadcast %38 : f32 to vector<32x256xf32>
    %58 = arith.mulf %57, %51 : vector<32x256xf32>
    %59 = arith.addf %56, %58 : vector<32x256xf32>
    %60 = vector.broadcast %49 : vector<1x1xf32> to vector<32x256xf32>
    %61 = arith.mulf %60, %59 : vector<32x256xf32>
    %62 = vector.broadcast %40 : f32 to vector<32x256xf32>
    %63 = arith.addf %61, %62 : vector<32x256xf32>
    %64 = math.tanh %63 : vector<32x256xf32>
    %65 = arith.addf %64, %35 : vector<32x256xf32>
    %cst_2 = arith.constant 0.000000e+00 : f32
    %66 = vector.broadcast %cst_2 : f32 to vector<32x256xf32>
    %67 = arith.select %2, %65, %66 : vector<32x256xi1>, vector<32x256xf32>
    %c10 = arith.constant 10 : index
    %68 = memref.load %arg0[%c10] : memref<15xf32, #tpu.memory_space<smem>>
    %c11 = arith.constant 11 : index
    %69 = memref.load %arg0[%c11] : memref<15xf32, #tpu.memory_space<smem>>
    %c12 = arith.constant 12 : index
    %70 = memref.load %arg0[%c12] : memref<15xf32, #tpu.memory_space<smem>>
    %c13 = arith.constant 13 : index
    %71 = memref.load %arg0[%c13] : memref<15xf32, #tpu.memory_space<smem>>
    %c14 = arith.constant 14 : index
    %72 = memref.load %arg0[%c14] : memref<15xf32, #tpu.memory_space<smem>>
    %73 = arith.mulf %68, %68 : f32
    %74 = arith.mulf %69, %69 : f32
    %75 = arith.addf %73, %74 : f32
    %76 = arith.mulf %70, %70 : f32
    %77 = arith.addf %75, %76 : f32
    %78 = vector.broadcast %77 : f32 to vector<1x1xf32>
    %79 = math.rsqrt %78 : vector<1x1xf32>
    %80 = vector.broadcast %71 : f32 to vector<1x1xf32>
    %81 = arith.mulf %80, %79 : vector<1x1xf32>
    %c4_i32 = arith.constant 4 : i32
    %82 = tpu.dynamic_rotate %67 by %c4_i32 dim 1 : vector<32x256xf32>, i32 -> vector<32x256xf32>
    %c252_i32 = arith.constant 252 : i32
    %83 = tpu.dynamic_rotate %67 by %c252_i32 dim 1 : vector<32x256xf32>, i32 -> vector<32x256xf32>
    %84 = vector.broadcast %68 : f32 to vector<32x256xf32>
    %85 = arith.mulf %84, %82 : vector<32x256xf32>
    %86 = vector.broadcast %69 : f32 to vector<32x256xf32>
    %87 = arith.mulf %86, %67 : vector<32x256xf32>
    %88 = arith.addf %85, %87 : vector<32x256xf32>
    %89 = vector.broadcast %70 : f32 to vector<32x256xf32>
    %90 = arith.mulf %89, %83 : vector<32x256xf32>
    %91 = arith.addf %88, %90 : vector<32x256xf32>
    %92 = vector.broadcast %81 : vector<1x1xf32> to vector<32x256xf32>
    %93 = arith.mulf %92, %91 : vector<32x256xf32>
    %94 = vector.broadcast %72 : f32 to vector<32x256xf32>
    %95 = arith.addf %93, %94 : vector<32x256xf32>
    %96 = math.tanh %95 : vector<32x256xf32>
    %97 = arith.addf %96, %67 : vector<32x256xf32>
    %cst_3 = arith.constant 0.000000e+00 : f32
    %98 = vector.broadcast %cst_3 : f32 to vector<32x256xf32>
    %99 = arith.select %2, %97, %98 : vector<32x256xi1>, vector<32x256xf32>
    %c0_4 = arith.constant 0 : index
    %c0_5 = arith.constant 0 : index
    %100 = vector.load %arg2[%c0_4, %c0_5] : memref<32x256xf32, #tpu.memory_space<vmem>>, vector<32x256xf32>
    tpu.vector_store %arg2[%c0_4, %c0_5], %99 {strides = array<i32>} : memref<32x256xf32, #tpu.memory_space<vmem>>, vector<32x256xf32>,
    return
  }
}

</mosaic_0001>

<bundles_post_ra>
// kernel: temporal_conv_stack.1
= control target key start
LH: loop header
LB: loop body
LE: loop exit
PB: predicated region body
PF: predicated region fallthrough
CT: control target
= control target key end

     0   :  { %7 = vsyncpa [#allocation3], 0  ;;  %s1031_s0 = inlined_call_operand.vmem [shape: f32[15], index: 0, kind: input, shape index: {}]   ;;  %s1032_s1 = inlined_call_operand.vmem [shape: f32[32,256], index: 1, kind: input, shape index: {}]   ;;  %s1033_s2 = inlined_call_operand.vmem [shape: f32[32,256], index: 2, kind: output, shape index: {}]  }
   0x1   :  { %s14_s11 = sshll.u32 %s1031_s0, 4  ;;  %s15_s11 = int_to_ptr.vmem [resolvable:$true] %s14_s11 }
   0x2   :  { %s569_s12 = scalar_lea.vmem %s15_s11, 16  ;;  %p574_p1 = scmp.lt.s32.totalorder %s15_s11, %s15_s11 }
   0x3   :  { %p570_p0 = scmp.ne.s32.totalorder %s15_s11, %s569_s12  ;;  %p575_p2 = scmp.lt.s32.totalorder %s569_s12, %s569_s12 }
   0x5   :  { %p576_p3 = por %p575_p2, %p574_p1 }
   0x7   :  { %p577_p4 = pnand %p576_p3, %p570_p0 }
   0x9   :  { %580 = shalt.err (!%p577_p4)
}
   0xa   :  { %s583_s13 = smov [#allocation2]  }
   0xb   :  { %17 = dma.vmem_to_smem %s15_s11, 16, %s583_s13, [#allocation3]  }
   0xc   :  { %581 = dma.done.wait [#allocation3], 16  }
   0xd   :  { %582 = vsyncadd [#allocation3], 4294967280 }
   0xe   :  { %23 = sfence }
   0xf   :  { %v611_v0 = vld [vmem:[%s1032_s1 + $0x20] sm:$0xff]  ;;  %s584_s17 = smov 1   ;;  %v623_v2 = vld [vmem:[%s1032_s1 + $0x30] sm:$0xff]  ;;  %v635_v4 = vld [vmem:[%s1032_s1 + $0x18] sm:$0xff]  ;;  %s585_s30 = smov 127   ;;  %v24_v12 = vlaneseq }
  0x10   :  { %v616_v1 = vld [vmem:[%s1032_s1] sm:$0xff]  ;;  %55 = vrot.lane.b32.xlu1 %v611_v0, %s584_s17  ;;  %v628_v3 = vld [vmem:[%s1032_s1 + $0x10] sm:$0xff]  ;;  %v640_v5 = vld [vmem:[%s1032_s1 + $0x8] sm:$0xff]  ;;  %s494_s3 = sld [smem:[#allocation2 + $0x1]]  ;;  %s664_s4 = sld [smem:[#allocation2 + $0x2]] }
  0x11   :  { %51 = vrot.lane.b32.xlu0 %v616_v1, %s584_s17  ;;  %v647_v6 = vld [vmem:[%s1032_s1 + $0x38] sm:$0xff]  ;;  %v652_v7 = vld [vmem:[%s1032_s1 + $0x28] sm:$0xff]  ;;  %s37_s1 = sld [smem:[#allocation2]]  ;;  %v670_v16 = vand.u32 127, %v24_v12  ;;  %s672_s10 = sld [smem:[#allocation2 + $0x3]] }
  0x12   :  { %s681_s11 = sld [smem:[#allocation2 + $0x4]]  ;;  %s586_s12 = smov 2  }
  0x13   :  { %vm67_vm0 = vcmp.lt.s32.totalorder %v670_v16, 1  ;;  %vm92_vm1 = vcmp.lt.s32.totalorder %v670_v16, 127  ;;  %s587_s13 = smov 126   ;;  %s498_s14 = sld [smem:[#allocation2 + $0x5]]  ;;  %vm215_vm3 = vcmp.lt.s32.totalorder %v670_v16, 2  ;;  %vm240_vm4 = vcmp.lt.s32.totalorder %v670_v16, 126 }
  0x14   :  { %57 = vrot.lane.b32.xlu1 %v623_v2, %s584_s17  ;;  %s499_s15 = sld [smem:[#allocation2 + $0x6]]  ;;  %s793_s16 = sld [smem:[#allocation2 + $0x7]]  ;;  %vm363_vm5 = vcmp.lt.s32.totalorder %v670_v16, 4  ;;  %vm388_vm6 = vcmp.lt.s32.totalorder %v670_v16, 124 }
  0x15   :  { %53 = vrot.lane.b32.xlu0 %v628_v3, %s584_s17  ;;  %s501_s21 = sld [smem:[#allocation2 + $0x8]]  ;;  %s502_s22 = sld [smem:[#allocation2 + $0x9]] }
  0x16   :  { %s43_s6 = smul.f32 %s494_s3, %s494_s3  ;;  %v110_v21 = vstv %s494_s3  ;;  %v127_v40 = vstv %s664_s4  ;;  %s588_s23 = smov 4  }
  0x17   :  { %s42_s5 = smul.f32 %s37_s1, %s37_s1  ;;  %v675_v22 = vstv %s37_s1  ;;  %v113_v25 = vmul.f32 %v110_v21, %v628_v3  ;;  %v114_v26 = vmul.f32 %v110_v21, %v635_v4  ;;  %v112_v31 = vmul.f32 %v110_v21, %v640_v5  ;;  %s589_s24 = smov 124  }
  0x18   :  { %61 = vrot.lane.b32.xlu1 %v635_v4, %s584_s17  ;;  %s45_s8 = smul.f32 %s664_s4, %s664_s4  ;;  %v111_v32 = vmul.f32 %v110_v21, %v616_v1  ;;  %v117_v35 = vmul.f32 %v110_v21, %v623_v2  ;;  %v49_v36 = vstv %s672_s10  ;;  %v118_v37 = vmul.f32 %v110_v21, %v647_v6  ;;  %s503_s25 = sld [smem:[#allocation2 + $0xa]] }
  0x19   :  { %59 = vrot.lane.b32.xlu0 %v640_v5, %s584_s17  ;;  %s44_s7 = sadd.f32 %s43_s6, %s42_s5  ;;  %v115_v39 = vmul.f32 %v110_v21, %v611_v0  ;;  %v116_v43 = vmul.f32 %v110_v21, %v652_v7  ;;  %v152_v57 = vstv %s681_s11  ;;  %s190_s0 = smul.f32 %s498_s14, %s498_s14 }
  0x1a   :  { %s193_s19 = smul.f32 %s793_s16, %s793_s16  ;;  %s504_s26 = sld [smem:[#allocation2 + $0xb]] }
  0x1b   :  { %s46_s9 = sadd.f32 %s45_s8, %s44_s7  ;;  %s930_s27 = sld [smem:[#allocation2 + $0xc]] }
  0x1c   :  { %65 = vrot.lane.b32.xlu1 %v647_v6, %s584_s17  ;;  %s936_s4 = sld [smem:[#allocation2 + $0xd]]  ;;  %s941_s5 = sld [smem:[#allocation2 + $0xe]] }
  0x1d   :  { %63 = vrot.lane.b32.xlu0 %v652_v7, %s584_s17  ;;  %v47_v15 = vstv %s46_s9  ;;  %s191_s17 = smul.f32 %s499_s15, %s499_s15 }
  0x1e   :  { %515 = vrsqrt.f32 %v47_v15  ;;  %s338_s28 = smul.f32 %s503_s25, %s503_s25 }
  0x1f   :  { %s192_s18 = sadd.f32 %s191_s17, %s190_s0 }
  0x20   :  { %78 = vrot.lane.b32.xlu1 %v628_v3, %s585_s30  ;;  %s339_s29 = smul.f32 %s504_s26, %s504_s26 }
  0x21   :  { %76 = vrot.lane.b32.xlu0 %v616_v1, %s585_s30  ;;  %s194_s20 = sadd.f32 %s193_s19, %s192_s18  ;;  %s341_s1 = smul.f32 %s930_s27, %s930_s27 }
  0x24   :  { %82 = vrot.lane.b32.xlu1 %v623_v2, %s585_s30 }
  0x25   :  { %80 = vrot.lane.b32.xlu0 %v611_v0, %s585_s30 }
  0x28   :  { %86 = vrot.lane.b32.xlu1 %v635_v4, %s585_s30  ;;  %v516_v33 = vpop.eup %515 }
  0x29   :  { %84 = vrot.lane.b32.xlu0 %v640_v5, %s585_s30  ;;  %v50_v48 = vmul.f32 %v516_v33, %v49_v36 }
  0x2c   :  { %90 = vrot.lane.b32.xlu1 %v647_v6, %s585_s30 }
  0x2d   :  { %88 = vrot.lane.b32.xlu0 %v652_v7, %s585_s30  ;;  %s340_s30 = sadd.f32 %s339_s29, %s338_s28 }
  0x2f   :  { %s342_s3 = sadd.f32 %s341_s1, %s340_s30 }
  0x82   :  { %v666_v8 = vpop.permute.xlu1 %55 }
  0x83   :  { %v52_v9 = vpop.permute.xlu0 %51 }
  0x86   :  { %v58_v10 = vpop.permute.xlu1 %57 }
  0x87   :  { %v54_v11 = vpop.permute.xlu0 %53 }
  0x8a   :  { %v62_v13 = vpop.permute.xlu1 %61 }
  0x8b   :  { %v60_v14 = vpop.permute.xlu0 %59  ;;  %v73_v23 = vsel %vm67_vm0, %v62_v13, %v54_v11  ;;  %v69_v29 = vsel %vm67_vm0, %v54_v11, %v62_v13 }
  0x8c   :  { %v72_v24 = vsel %vm67_vm0, %v60_v14, %v52_v9  ;;  %v104_v30 = vmul.f32 %v675_v22, %v73_v23  ;;  %v105_v41 = vmul.f32 %v675_v22, %v69_v29  ;;  %v68_v42 = vsel %vm67_vm0, %v52_v9, %v60_v14 }
  0x8d   :  { %v102_v34 = vmul.f32 %v675_v22, %v72_v24  ;;  %v103_v55 = vmul.f32 %v675_v22, %v68_v42 }
  0x8e   :  { %v66_v17 = vpop.permute.xlu1 %65  ;;  %v121_v47 = vadd.f32 %v113_v25, %v104_v30  ;;  %v122_v59 = vadd.f32 %v114_v26, %v105_v41 }
  0x8f   :  { %v64_v18 = vpop.permute.xlu0 %63  ;;  %v75_v38 = vsel %vm67_vm0, %v66_v17, %v58_v10  ;;  %v119_v51 = vadd.f32 %v111_v32, %v102_v34  ;;  %v71_v60 = vsel %vm67_vm0, %v58_v10, %v66_v17  ;;  %v120_v29 = vadd.f32 %v112_v31, %v103_v55 }
  0x90   :  { %v74_v44 = vsel %vm67_vm0, %v64_v18, %v666_v8  ;;  %v108_v52 = vmul.f32 %v675_v22, %v75_v38  ;;  %v70_v11 = vsel %vm67_vm0, %v666_v8, %v64_v18  ;;  %v109_v8 = vmul.f32 %v675_v22, %v71_v60 }
  0x91   :  { %v106_v56 = vmul.f32 %v675_v22, %v74_v44  ;;  %v107_v34 = vmul.f32 %v675_v22, %v70_v11 }
  0x92   :  { %v79_v19 = vpop.permute.xlu1 %78  ;;  %v125_v15 = vadd.f32 %v117_v35, %v108_v52 }
  0x93   :  { %v77_v20 = vpop.permute.xlu0 %76  ;;  %v123_v21 = vadd.f32 %v115_v39, %v106_v56  ;;  %v126_v39 = vadd.f32 %v118_v37, %v109_v8 }
  0x96   :  { %v83_v27 = vpop.permute.xlu1 %82 }
  0x97   :  { %v81_v28 = vpop.permute.xlu0 %80 }
  0x9a   :  { %v87_v45 = vpop.permute.xlu1 %86 }
  0x9b   :  { %v85_v46 = vpop.permute.xlu0 %84  ;;  %v94_v49 = vsel %vm92_vm1, %v79_v19, %v87_v45  ;;  %v98_v58 = vsel %vm92_vm1, %v87_v45, %v79_v19 }
  0x9c   :  { %v93_v50 = vsel %vm92_vm1, %v77_v20, %v85_v46  ;;  %v130_v53 = vmul.f32 %v127_v40, %v94_v49  ;;  %v97_v12 = vsel %vm92_vm1, %v85_v46, %v77_v20  ;;  %v131_v19 = vmul.f32 %v127_v40, %v98_v58 }
  0x9d   :  { %v128_v54 = vmul.f32 %v127_v40, %v93_v50  ;;  %v129_v20 = vmul.f32 %v127_v40, %v97_v12  ;;  %v124_v46 = vadd.f32 %v116_v43, %v107_v34 }
  0x9e   :  { %v138_v61 = vadd.f32 %v130_v53, %v121_v47  ;;  %v91_v63 = vpop.permute.xlu1 %90  ;;  %v139_v35 = vadd.f32 %v131_v19, %v122_v59 }
  0x9f   :  { %v136_v62 = vadd.f32 %v128_v54, %v119_v51  ;;  %v89_v9 = vpop.permute.xlu0 %88  ;;  %v96_v13 = vsel %vm92_vm1, %v83_v27, %v91_v63  ;;  %v100_v23 = vsel %vm92_vm1, %v91_v63, %v83_v27  ;;  %v137_v41 = vadd.f32 %v129_v20, %v120_v29 }
  0xa0   :  { %v95_v14 = vsel %vm92_vm1, %v81_v28, %v89_v9  ;;  %v146_v10 = vmul.f32 %v138_v61, %v50_v48  ;;  %v134_v24 = vmul.f32 %v127_v40, %v96_v13  ;;  %v99_v32 = vsel %vm92_vm1, %v89_v9, %v81_v28 }
  0xa1   :  { %v144_v17 = vmul.f32 %v136_v62, %v50_v48  ;;  %v132_v25 = vmul.f32 %v127_v40, %v95_v14  ;;  %v135_v36 = vmul.f32 %v127_v40, %v100_v23  ;;  %v133_v42 = vmul.f32 %v127_v40, %v99_v32 }
  0xa2   :  { %v155_v18 = vadd.f32 %v152_v57, %v146_v10  ;;  %v142_v30 = vadd.f32 %v134_v24, %v125_v15  ;;  %v147_v31 = vmul.f32 %v139_v35, %v50_v48  ;;  %v145_v49 = vmul.f32 %v137_v41, %v50_v48 }
  0xa3   :  { %v153_v26 = vadd.f32 %v152_v57, %v144_v17  ;;  %v140_v33 = vadd.f32 %v132_v25, %v123_v21  ;;  %v143_v47 = vadd.f32 %v135_v36, %v126_v39  ;;  %v141_v28 = vadd.f32 %v133_v42, %v124_v46 }
  0xa4   :  { %517 = vtanh.f32 %v155_v18  ;;  %v150_v38 = vmul.f32 %v142_v30, %v50_v48  ;;  %v156_v50 = vadd.f32 %v152_v57, %v147_v31  ;;  %v154_v52 = vadd.f32 %v152_v57, %v145_v49 }
  0xa5   :  { %v148_v27 = vmul.f32 %v140_v33, %v50_v48  ;;  %519 = vtanh.f32 %v153_v26  ;;  %v151_v22 = vmul.f32 %v143_v47, %v50_v48  ;;  %v149_v53 = vmul.f32 %v141_v28, %v50_v48 }
  0xa6   :  { %v159_v44 = vadd.f32 %v152_v57, %v150_v38  ;;  %v195_v15 = vstv %s194_s20  ;;  %v800_v23 = vstv %s499_s15  ;;  %v249_v25 = vstv %s498_s14 }
  0xa7   :  { %v157_v45 = vadd.f32 %v152_v57, %v148_v27  ;;  %v160_v40 = vadd.f32 %v152_v57, %v151_v22  ;;  %v158_v55 = vadd.f32 %v152_v57, %v149_v53  ;;  %v755_v57 = vadd.s32 128, %v670_v16 }
  0xa8   :  { %521 = vtanh.f32 %v159_v44  ;;  %v197_v38 = vstv %s501_s21  ;;  %v275_v42 = vstv %s793_s16 }
  0xa9   :  { %523 = vtanh.f32 %v157_v45  ;;  %vm28_vm2 = vcmp.lt.s32.totalorder %v755_v57, 168 }
  0xaa   :  { %525 = vtanh.f32 %v156_v50  ;;  %v830_v50 = vstv %s502_s22 }
  0xab   :  { %527 = vtanh.f32 %v154_v52 }
  0xac   :  { %529 = vtanh.f32 %v160_v40 }
  0xad   :  { %531 = vtanh.f32 %v158_v55 }
  0xae   :  { %v518_v51 = vpop.eup %517  ;;  %533 = vrsqrt.f32 %v195_v15 }
  0xaf   :  { %v734_v54 = vadd.f32 %v518_v51, %v628_v3  ;;  %v520_v37 = vpop.eup %519 }
  0xb0   :  { %v739_v43 = vadd.f32 %v520_v37, %v616_v1 }
  0xb1   :  { %201 = vrot.lane.b32.xlu1 %v734_v54, %s586_s12  ;;  %v261_v26 = vmul.f32 %v800_v23, %v734_v54 }
  0xb2   :  { %v522_v56 = vpop.eup %521  ;;  %199 = vrot.lane.b32.xlu0 %v739_v43, %s586_s12  ;;  %v259_v27 = vmul.f32 %v800_v23, %v739_v43 }
  0xb3   :  { %v744_v3 = vadd.f32 %v522_v56, %v623_v2  ;;  %v524_v48 = vpop.eup %523 }
  0xb4   :  { %v749_v58 = vadd.f32 %v524_v48, %v611_v0  ;;  %v526_v1 = vpop.eup %525 }
  0xb5   :  { %205 = vrot.lane.b32.xlu1 %v744_v3, %s586_s12  ;;  %v528_v2 = vpop.eup %527  ;;  %v172_v59 = vadd.f32 %v526_v1, %v635_v4  ;;  %v265_v41 = vmul.f32 %v800_v23, %v744_v3 }
  0xb6   :  { %203 = vrot.lane.b32.xlu0 %v749_v58, %s586_s12  ;;  %v530_v60 = vpop.eup %529  ;;  %v170_v0 = vadd.f32 %v528_v2, %v640_v5  ;;  %v263_v49 = vmul.f32 %v800_v23, %v749_v58 }
  0xb7   :  { %v532_v61 = vpop.eup %531  ;;  %v765_v62 = vsel %vm28_vm2, %v172_v59, 0.0  ;;  %v176_v63 = vadd.f32 %v530_v60, %v647_v6 }
  0xb8   :  { %v772_v4 = vsel %vm28_vm2, %v170_v0, 0.0  ;;  %v174_v9 = vadd.f32 %v532_v61, %v652_v7  ;;  %v262_v29 = vmul.f32 %v800_v23, %v765_v62  ;;  %v534_v33 = vpop.eup %533 }
  0xb9   :  { %226 = vrot.lane.b32.xlu1 %v734_v54, %s587_s13  ;;  %v779_v5 = vsel %vm28_vm2, %v176_v63, 0.0  ;;  %v260_v39 = vmul.f32 %v800_v23, %v772_v4  ;;  %v828_v28 = vmul.f32 %v534_v33, %v197_v38 }
  0xba   :  { %224 = vrot.lane.b32.xlu0 %v739_v43, %s587_s13  ;;  %v785_v6 = vsel %vm28_vm2, %v174_v9, 0.0  ;;  %v266_v46 = vmul.f32 %v800_v23, %v779_v5 }
  0xbd   :  { %230 = vrot.lane.b32.xlu1 %v744_v3, %s587_s13 }
  0xbe   :  { %228 = vrot.lane.b32.xlu0 %v749_v58, %s587_s13 }
  0xc1   :  { %209 = vrot.lane.b32.xlu1 %v765_v62, %s586_s12 }
  0xc2   :  { %207 = vrot.lane.b32.xlu0 %v772_v4, %s586_s12 }
  0xc5   :  { %213 = vrot.lane.b32.xlu1 %v779_v5, %s586_s12 }
  0xc6   :  { %211 = vrot.lane.b32.xlu0 %v785_v6, %s586_s12 }
  0xc9   :  { %234 = vrot.lane.b32.xlu1 %v765_v62, %s587_s13 }
  0xca   :  { %232 = vrot.lane.b32.xlu0 %v772_v4, %s587_s13 }
  0xcd   :  { %238 = vrot.lane.b32.xlu1 %v779_v5, %s587_s13 }
  0xce   :  { %236 = vrot.lane.b32.xlu0 %v785_v6, %s587_s13 }
 0x123   :  { %v202_v7 = vpop.permute.xlu1 %201 }
 0x124   :  { %v200_v11 = vpop.permute.xlu0 %199 }
 0x127   :  { %v206_v12 = vpop.permute.xlu1 %205 }
 0x128   :  { %v204_v13 = vpop.permute.xlu0 %203 }
 0x12b   :  { %v227_v14 = vpop.permute.xlu1 %226 }
 0x12c   :  { %v225_v19 = vpop.permute.xlu0 %224 }
 0x12f   :  { %v231_v10 = vpop.permute.xlu1 %230 }
 0x130   :  { %v797_v17 = vpop.permute.xlu0 %228 }
 0x133   :  { %v210_v21 = vpop.permute.xlu1 %209 }
 0x134   :  { %v208_v24 = vpop.permute.xlu0 %207  ;;  %v217_v8 = vsel %vm215_vm3, %v202_v7, %v210_v21  ;;  %v221_v18 = vsel %vm215_vm3, %v210_v21, %v202_v7 }
 0x135   :  { %v216_v30 = vsel %vm215_vm3, %v200_v11, %v208_v24  ;;  %v220_v32 = vsel %vm215_vm3, %v208_v24, %v200_v11  ;;  %v252_v34 = vmul.f32 %v249_v25, %v221_v18  ;;  %v253_v35 = vmul.f32 %v249_v25, %v217_v8 }
 0x136   :  { %v250_v44 = vmul.f32 %v249_v25, %v220_v32  ;;  %v251_v45 = vmul.f32 %v249_v25, %v216_v30 }
 0x137   :  { %v214_v20 = vpop.permute.xlu1 %213  ;;  %v269_v51 = vadd.f32 %v261_v26, %v252_v34  ;;  %v270_v52 = vadd.f32 %v262_v29, %v253_v35 }
 0x138   :  { %v212_v36 = vpop.permute.xlu0 %211  ;;  %v223_v31 = vsel %vm215_vm3, %v214_v20, %v206_v12  ;;  %v219_v55 = vsel %vm215_vm3, %v206_v12, %v214_v20  ;;  %v267_v2 = vadd.f32 %v259_v27, %v250_v44  ;;  %v268_v59 = vadd.f32 %v260_v39, %v251_v45 }
 0x139   :  { %v222_v53 = vsel %vm215_vm3, %v212_v36, %v204_v13  ;;  %v256_v56 = vmul.f32 %v249_v25, %v223_v31  ;;  %v218_v63 = vsel %vm215_vm3, %v204_v13, %v212_v36  ;;  %v257_v12 = vmul.f32 %v249_v25, %v219_v55 }
 0x13a   :  { %v254_v9 = vmul.f32 %v249_v25, %v222_v53  ;;  %v255_v26 = vmul.f32 %v249_v25, %v218_v63  ;;  %v264_v25 = vmul.f32 %v800_v23, %v785_v6 }
 0x13b   :  { %v235_v47 = vpop.permute.xlu1 %234  ;;  %v273_v8 = vadd.f32 %v265_v41, %v256_v56  ;;  %v274_v41 = vadd.f32 %v266_v46, %v257_v12 }
 0x13c   :  { %v242_v22 = vsel %vm240_vm4, %v227_v14, %v235_v47  ;;  %v233_v40 = vpop.permute.xlu0 %232  ;;  %v246_v48 = vsel %vm240_vm4, %v235_v47, %v227_v14  ;;  %v271_v32 = vadd.f32 %v263_v49, %v254_v9  ;;  %v272_v47 = vadd.f32 %v264_v25, %v255_v26 }
 0x13d   :  { %v278_v37 = vmul.f32 %v275_v42, %v242_v22  ;;  %v241_v1 = vsel %vm240_vm4, %v225_v19, %v233_v40  ;;  %v245_v7 = vsel %vm240_vm4, %v233_v40, %v225_v19  ;;  %v279_v14 = vmul.f32 %v275_v42, %v246_v48 }
 0x13e   :  { %v276_v0 = vmul.f32 %v275_v42, %v241_v1  ;;  %v277_v29 = vmul.f32 %v275_v42, %v245_v7  ;;  %v397_v26 = vstv %s503_s25 }
 0x13f   :  { %v286_v60 = vadd.f32 %v278_v37, %v269_v51  ;;  %v239_v61 = vpop.permute.xlu1 %238  ;;  %v287_v36 = vadd.f32 %v279_v14, %v270_v52 }
 0x140   :  { %v244_v11 = vsel %vm240_vm4, %v231_v10, %v239_v61  ;;  %v284_v21 = vadd.f32 %v276_v0, %v267_v2  ;;  %v237_v24 = vpop.permute.xlu0 %236  ;;  %v248_v18 = vsel %vm240_vm4, %v239_v61, %v231_v10  ;;  %v285_v44 = vadd.f32 %v277_v29, %v268_v59 }
 0x141   :  { %v294_v15 = vmul.f32 %v286_v60, %v828_v28  ;;  %v282_v20 = vmul.f32 %v275_v42, %v244_v11  ;;  %v243_v13 = vsel %vm240_vm4, %v797_v17, %v237_v24  ;;  %v247_v34 = vsel %vm240_vm4, %v237_v24, %v797_v17 }
 0x142   :  { %v292_v30 = vmul.f32 %v284_v21, %v828_v28  ;;  %v280_v35 = vmul.f32 %v275_v42, %v243_v13  ;;  %v283_v38 = vmul.f32 %v275_v42, %v248_v18  ;;  %v281_v45 = vmul.f32 %v275_v42, %v247_v34 }
 0x143   :  { %v303_v19 = vadd.f32 %v830_v50, %v294_v15  ;;  %v290_v33 = vadd.f32 %v282_v20, %v273_v8  ;;  %v295_v49 = vmul.f32 %v287_v36, %v828_v28  ;;  %v293_v23 = vmul.f32 %v285_v44, %v828_v28 }
 0x144   :  { %v301_v10 = vadd.f32 %v830_v50, %v292_v30  ;;  %v288_v39 = vadd.f32 %v280_v35, %v271_v32  ;;  %v291_v22 = vadd.f32 %v283_v38, %v274_v41  ;;  %v289_v52 = vadd.f32 %v281_v45, %v272_v47 }
 0x145   :  { %535 = vtanh.f32 %v303_v19  ;;  %v298_v27 = vmul.f32 %v290_v33, %v828_v28  ;;  %v304_v46 = vadd.f32 %v830_v50, %v295_v49  ;;  %v302_v37 = vadd.f32 %v830_v50, %v293_v23 }
 0x146   :  { %537 = vtanh.f32 %v301_v10  ;;  %v296_v17 = vmul.f32 %v288_v39, %v828_v28  ;;  %v299_v53 = vmul.f32 %v291_v22, %v828_v28  ;;  %v297_v40 = vmul.f32 %v289_v52, %v828_v28 }
 0x147   :  { %v307_v31 = vadd.f32 %v830_v50, %v298_v27  ;;  %v343_v21 = vstv %s342_s3  ;;  %v406_v20 = vstv %s504_s26  ;;  %v345_v47 = vstv %s936_s4 }
 0x148   :  { %v305_v51 = vadd.f32 %v830_v50, %v296_v17  ;;  %v308_v48 = vadd.f32 %v830_v50, %v299_v53  ;;  %v306_v2 = vadd.f32 %v830_v50, %v297_v40 }
 0x149   :  { %539 = vtanh.f32 %v307_v31 }
 0x14a   :  { %541 = vtanh.f32 %v305_v51 }
 0x14b   :  { %543 = vtanh.f32 %v304_v46 }
 0x14c   :  { %545 = vtanh.f32 %v302_v37 }
 0x14d   :  { %547 = vtanh.f32 %v308_v48  ;;  %v448_v48 = vstv %s941_s5 }
 0x14e   :  { %549 = vtanh.f32 %v306_v2 }
 0x14f   :  { %v536_v42 = vpop.eup %535  ;;  %551 = vrsqrt.f32 %v343_v21 }
 0x150   :  { %v873_v55 = vadd.f32 %v536_v42, %v734_v54  ;;  %v538_v56 = vpop.eup %537  ;;  %v423_v42 = vstv %s930_s27 }
 0x151   :  { %v879_v1 = vadd.f32 %v538_v56, %v739_v43 }
 0x152   :  { %349 = vrot.lane.b32.xlu1 %v873_v55, %s588_s23  ;;  %v409_v30 = vmul.f32 %v406_v20, %v873_v55 }
 0x153   :  { %v540_v59 = vpop.eup %539  ;;  %347 = vrot.lane.b32.xlu0 %v879_v1, %s588_s23  ;;  %v407_v34 = vmul.f32 %v406_v20, %v879_v1 }
 0x154   :  { %v885_v54 = vadd.f32 %v540_v59, %v744_v3  ;;  %v542_v28 = vpop.eup %541 }
 0x155   :  { %v890_v60 = vadd.f32 %v542_v28, %v749_v58  ;;  %v544_v43 = vpop.eup %543 }
 0x156   :  { %353 = vrot.lane.b32.xlu1 %v885_v54, %s588_s23  ;;  %v546_v50 = vpop.eup %545  ;;  %v320_v3 = vadd.f32 %v544_v43, %v765_v62  ;;  %v413_v27 = vmul.f32 %v406_v20, %v885_v54 }
 0x157   :  { %351 = vrot.lane.b32.xlu0 %v890_v60, %s588_s23  ;;  %v548_v0 = vpop.eup %547  ;;  %v318_v61 = vadd.f32 %v546_v50, %v772_v4  ;;  %v411_v22 = vmul.f32 %v406_v20, %v890_v60 }
 0x158   :  { %v550_v63 = vpop.eup %549  ;;  %v902_v58 = vsel %vm28_vm2, %v320_v3, 0.0  ;;  %v324_v9 = vadd.f32 %v548_v0, %v779_v5 }
 0x159   :  { %v909_v62 = vsel %vm28_vm2, %v318_v61, 0.0  ;;  %v322_v7 = vadd.f32 %v550_v63, %v785_v6  ;;  %v410_v32 = vmul.f32 %v406_v20, %v902_v58  ;;  %v552_v44 = vpop.eup %551 }
 0x15a   :  { %374 = vrot.lane.b32.xlu1 %v873_v55, %s589_s24  ;;  %v916_v4 = vsel %vm28_vm2, %v324_v9, 0.0  ;;  %v408_v10 = vmul.f32 %v406_v20, %v909_v62  ;;  %v346_v56 = vmul.f32 %v552_v44, %v345_v47 }
 0x15b   :  { %372 = vrot.lane.b32.xlu0 %v879_v1, %s589_s24  ;;  %v922_v5 = vsel %vm28_vm2, %v322_v7, 0.0  ;;  %v414_v39 = vmul.f32 %v406_v20, %v916_v4 }
 0x15c   :  { %v412_v51 = vmul.f32 %v406_v20, %v922_v5 }
 0x15e   :  { %378 = vrot.lane.b32.xlu1 %v885_v54, %s589_s24 }
 0x15f   :  { %376 = vrot.lane.b32.xlu0 %v890_v60, %s589_s24 }
 0x162   :  { %357 = vrot.lane.b32.xlu1 %v902_v58, %s588_s23 }
 0x163   :  { %355 = vrot.lane.b32.xlu0 %v909_v62, %s588_s23 }
 0x166   :  { %361 = vrot.lane.b32.xlu1 %v916_v4, %s588_s23 }
 0x167   :  { %359 = vrot.lane.b32.xlu0 %v922_v5, %s588_s23 }
 0x16a   :  { %382 = vrot.lane.b32.xlu1 %v902_v58, %s589_s24 }
 0x16b   :  { %380 = vrot.lane.b32.xlu0 %v909_v62, %s589_s24 }
 0x16e   :  { %386 = vrot.lane.b32.xlu1 %v916_v4, %s589_s24 }
 0x16f   :  { %384 = vrot.lane.b32.xlu0 %v922_v5, %s589_s24 }
 0x1c4   :  { %v350_v6 = vpop.permute.xlu1 %349 }
 0x1c5   :  { %v348_v11 = vpop.permute.xlu0 %347 }
 0x1c8   :  { %v354_v12 = vpop.permute.xlu1 %353 }
 0x1c9   :  { %v352_v14 = vpop.permute.xlu0 %351 }
 0x1cc   :  { %v375_v15 = vpop.permute.xlu1 %374 }
 0x1cd   :  { %v373_v24 = vpop.permute.xlu0 %372 }
 0x1d0   :  { %v934_v8 = vpop.permute.xlu1 %378 }
 0x1d1   :  { %v938_v18 = vpop.permute.xlu0 %376 }
 0x1d4   :  { %v358_v13 = vpop.permute.xlu1 %357 }
 0x1d5   :  { %v365_v19 = vsel %vm363_vm5, %v350_v6, %v358_v13  ;;  %v369_v29 = vsel %vm363_vm5, %v358_v13, %v350_v6  ;;  %v356_v33 = vpop.permute.xlu0 %355 }
 0x1d6   :  { %v364_v35 = vsel %vm363_vm5, %v348_v11, %v356_v33  ;;  %v368_v36 = vsel %vm363_vm5, %v356_v33, %v348_v11  ;;  %v400_v38 = vmul.f32 %v397_v26, %v369_v29  ;;  %v401_v25 = vmul.f32 %v397_v26, %v365_v19 }
 0x1d7   :  { %v398_v45 = vmul.f32 %v397_v26, %v368_v36  ;;  %v399_v49 = vmul.f32 %v397_v26, %v364_v35 }
 0x1d8   :  { %v362_v41 = vpop.permute.xlu1 %361  ;;  %v417_v37 = vadd.f32 %v409_v30, %v400_v38  ;;  %v418_v40 = vadd.f32 %v410_v32, %v401_v25 }
 0x1d9   :  { %v367_v31 = vsel %vm363_vm5, %v354_v12, %v362_v41  ;;  %v371_v17 = vsel %vm363_vm5, %v362_v41, %v354_v12  ;;  %v360_v23 = vpop.permute.xlu0 %359  ;;  %v415_v59 = vadd.f32 %v407_v34, %v398_v45  ;;  %v416_v3 = vadd.f32 %v408_v10, %v399_v49 }
 0x1da   :  { %v404_v52 = vmul.f32 %v397_v26, %v371_v17  ;;  %v405_v46 = vmul.f32 %v397_v26, %v367_v31  ;;  %v370_v53 = vsel %vm363_vm5, %v360_v23, %v352_v14  ;;  %v366_v0 = vsel %vm363_vm5, %v352_v14, %v360_v23 }
 0x1db   :  { %v402_v28 = vmul.f32 %v397_v26, %v370_v53  ;;  %v403_v29 = vmul.f32 %v397_v26, %v366_v0 }
 0x1dc   :  { %v383_v2 = vpop.permute.xlu1 %382  ;;  %v421_v7 = vadd.f32 %v413_v27, %v404_v52  ;;  %v422_v6 = vadd.f32 %v414_v39, %v405_v46 }
 0x1dd   :  { %v390_v43 = vsel %vm388_vm6, %v375_v15, %v383_v2  ;;  %v394_v50 = vsel %vm388_vm6, %v383_v2, %v375_v15  ;;  %v381_v9 = vpop.permute.xlu0 %380  ;;  %v419_v30 = vadd.f32 %v411_v22, %v402_v28  ;;  %v420_v47 = vadd.f32 %v412_v51, %v403_v29 }
 0x1de   :  { %v426_v61 = vmul.f32 %v423_v42, %v390_v43  ;;  %v427_v63 = vmul.f32 %v423_v42, %v394_v50  ;;  %v389_v11 = vsel %vm388_vm6, %v373_v24, %v381_v9  ;;  %v393_v12 = vsel %vm388_vm6, %v381_v9, %v373_v24 }
 0x1df   :  { %v424_v13 = vmul.f32 %v423_v42, %v389_v11  ;;  %v425_v19 = vmul.f32 %v423_v42, %v393_v12 }
 0x1e0   :  { %v434_v21 = vadd.f32 %v426_v61, %v417_v37  ;;  %v435_v20 = vadd.f32 %v427_v63, %v418_v40  ;;  %v387_v15 = vpop.permute.xlu1 %386 }
 0x1e1   :  { %v392_v14 = vsel %vm388_vm6, %v934_v8, %v387_v15  ;;  %v396_v32 = vsel %vm388_vm6, %v387_v15, %v934_v8  ;;  %v432_v35 = vadd.f32 %v424_v13, %v415_v59  ;;  %v433_v36 = vadd.f32 %v425_v19, %v416_v3  ;;  %v385_v24 = vpop.permute.xlu0 %384 }
 0x1e2   :  { %v442_v33 = vmul.f32 %v434_v21, %v346_v56  ;;  %v443_v34 = vmul.f32 %v435_v20, %v346_v56  ;;  %v430_v10 = vmul.f32 %v423_v42, %v392_v14  ;;  %v431_v38 = vmul.f32 %v423_v42, %v396_v32 }
 0x1e3   :  { %v391_v26 = vsel %vm388_vm6, %v938_v18, %v385_v24  ;;  %v395_v25 = vsel %vm388_vm6, %v385_v24, %v938_v18  ;;  %v440_v41 = vmul.f32 %v432_v35, %v346_v56  ;;  %v441_v44 = vmul.f32 %v433_v36, %v346_v56 }
 0x1e4   :  { %v451_v27 = vadd.f32 %v448_v48, %v442_v33  ;;  %v452_v39 = vadd.f32 %v448_v48, %v443_v34  ;;  %v438_v8 = vadd.f32 %v430_v10, %v421_v7  ;;  %v439_v45 = vadd.f32 %v431_v38, %v422_v6 }
 0x1e5   :  { %v428_v31 = vmul.f32 %v423_v42, %v391_v26  ;;  %v429_v17 = vmul.f32 %v423_v42, %v395_v25  ;;  %v449_v49 = vadd.f32 %v448_v48, %v440_v41  ;;  %v450_v22 = vadd.f32 %v448_v48, %v441_v44 }
 0x1e6   :  { %553 = vtanh.f32 %v451_v27  ;;  %v446_v23 = vmul.f32 %v438_v8, %v346_v56  ;;  %v447_v52 = vmul.f32 %v439_v45, %v346_v56 }
 0x1e7   :  { %555 = vtanh.f32 %v452_v39  ;;  %v436_v46 = vadd.f32 %v428_v31, %v419_v30  ;;  %v437_v53 = vadd.f32 %v429_v17, %v420_v47 }
 0x1e8   :  { %557 = vtanh.f32 %v449_v49  ;;  %v455_v16 = vadd.f32 %v448_v48, %v446_v23  ;;  %v456_v18 = vadd.f32 %v448_v48, %v447_v52 }
 0x1e9   :  { %559 = vtanh.f32 %v450_v22  ;;  %v444_v37 = vmul.f32 %v436_v46, %v346_v56  ;;  %v445_v40 = vmul.f32 %v437_v53, %v346_v56 }
 0x1ea   :  { %561 = vtanh.f32 %v455_v16 }
 0x1eb   :  { %v453_v2 = vadd.f32 %v448_v48, %v444_v37  ;;  %563 = vtanh.f32 %v456_v18  ;;  %v454_v59 = vadd.f32 %v448_v48, %v445_v40 }
 0x1ed   :  { %565 = vtanh.f32 %v453_v2 }
 0x1ee   :  { %567 = vtanh.f32 %v454_v59 }
 0x1f0   :  { %v554_v51 = vpop.eup %553 }
 0x1f1   :  { %v556_v42 = vpop.eup %555  ;;  %v467_v28 = vadd.f32 %v554_v51, %v873_v55 }
 0x1f2   :  { %v558_v43 = vpop.eup %557  ;;  %v468_v50 = vadd.f32 %v556_v42, %v902_v58 }
 0x1f3   :  { %v560_v3 = vpop.eup %559  ;;  %483 = vst [vmem:[%s1033_s2 + $0x10] sm:$0xff] %v467_v28  ;;  %v465_v56 = vadd.f32 %v558_v43, %v879_v1 }
 0x1f4   :  { %v476_v0 = vsel %vm28_vm2, %v468_v50, 0.0  ;;  %v466_v48 = vadd.f32 %v560_v3, %v909_v62  ;;  %v562_v61 = vpop.eup %561 }
 0x1f5   :  { %484 = vst [vmem:[%s1033_s2 + $0x18] sm:$0xff] %v476_v0  ;;  %481 = vst [vmem:[%s1033_s2] sm:$0xff] %v465_v56  ;;  %v564_v55 = vpop.eup %563  ;;  %v471_v1 = vadd.f32 %v562_v61, %v885_v54 }
 0x1f6   :  { %v474_v58 = vsel %vm28_vm2, %v466_v48, 0.0  ;;  %v472_v62 = vadd.f32 %v564_v55, %v916_v4 }
 0x1f7   :  { %v566_v63 = vpop.eup %565  ;;  %482 = vst [vmem:[%s1033_s2 + $0x8] sm:$0xff] %v474_v58  ;;  %487 = vst [vmem:[%s1033_s2 + $0x30] sm:$0xff] %v471_v1 }
 0x1f8   :  { %v568_v9 = vpop.eup %567  ;;  %v469_v7 = vadd.f32 %v566_v63, %v890_v60  ;;  %v480_v6 = vsel %vm28_vm2, %v472_v62, 0.0 }
 0x1f9   :  { %v470_v11 = vadd.f32 %v568_v9, %v922_v5  ;;  %488 = vst [vmem:[%s1033_s2 + $0x38] sm:$0xff] %v480_v6 }
 0x1fa   :  { %485 = vst [vmem:[%s1033_s2 + $0x20] sm:$0xff] %v469_v7 }
 0x1fb   :  { %v478_v54 = vsel %vm28_vm2, %v470_v11, 0.0 }
 0x1fc   :  { %486 = vst [vmem:[%s1033_s2 + $0x28] sm:$0xff] %v478_v54 }
 0x1fd   :  { %493 = vsyncpa [#allocation3], 1 }

</bundles_post_ra>
